<compile_context>
chip_gen: v5e
topology: v5e:2x2
jax: 0.10.0
libtpu: 0.0.40
codegen_flags: <defaults>
</compile_context>

<pallas_src>
import functools

import jax
import jax.numpy as jnp
from jax import lax
from jax.experimental import pallas as pl
from jax.experimental.pallas import tpu as pltpu

EPS = 1e-5
LANES = 128  # lane-dense padding width for the output / packed vectors


def simple_fnn_kernel(x_ref, w1_ref, w2_ref, w3_ref, w4_ref, vec_ref, o_ref):
    # vec_ref rows: 0:g1 1:be1 2:g2 3:be2 4:g3 5:be3 6:b4(padded) 7:zero-pad
    x = x_ref[...]
    vec = vec_ref[...]
    n1 = w1_ref.shape[1]
    n2 = w2_ref.shape[1]
    n3 = w3_ref.shape[1]
    inv_b = 1.0 / x.shape[0]

    def bn_relu(h, gamma, beta):
        # One-pass batch stats + folded affine + ReLU.
        s = jnp.sum(h, axis=0, keepdims=True)
        ss = jnp.sum(h * h, axis=0, keepdims=True)
        mu = s * inv_b
        var = ss * inv_b - mu * mu
        scale = gamma * lax.rsqrt(var + EPS)   # rsqrt -> EUP slot
        shift = beta - mu * scale
        return jnp.maximum(h * scale + shift, 0.0)

    # layer1..3: Linear (bias dropped: cancelled by BN) -> BN -> ReLU
    h = jnp.dot(x, w1_ref[...], preferred_element_type=jnp.float32)
    h = bn_relu(h, vec[0:1, :n1], vec[1:2, :n1])

    h = jnp.dot(h, w2_ref[...], preferred_element_type=jnp.float32)
    h = bn_relu(h, vec[2:3, :n2], vec[3:4, :n2])

    h = jnp.dot(h, w3_ref[...], preferred_element_type=jnp.float32)
    h = bn_relu(h, vec[4:5, :n3], vec[5:6, :n3])

    # layer4: Linear only (lane-dense 128-wide output; padded columns are zero)
    y = jnp.dot(h, w4_ref[...], preferred_element_type=jnp.float32) + vec[6:7, :]
    o_ref[...] = y.astype(o_ref.dtype)


def pack_params(params):
    """One-time packing (outside the hot path): pad w4 to 128 lanes, pack all
    per-feature vectors into a single (8, 128) f32 slab."""
    def row(v):
        v = jnp.asarray(v, jnp.float32).reshape(1, -1)
        return jnp.pad(v, ((0, 0), (0, LANES - v.shape[1])))

    vec = jnp.concatenate(
        [
            row(params["g1"]), row(params["be1"]),
            row(params["g2"]), row(params["be2"]),
            row(params["g3"]), row(params["be3"]),
            row(params["b4"]),
            jnp.zeros((1, LANES), jnp.float32),
        ],
        axis=0,
    )  # (8, 128)
    w4p = jnp.pad(params["w4"], ((0, 0), (0, LANES - params["w4"].shape[1])))
    return params["w1"], params["w2"], params["w3"], w4p, vec


@functools.partial(jax.jit, static_argnames=("y_dim",))
def simple_fnn_forward(x, w1, w2, w3, w4p, vec, *, y_dim):
    b = x.shape[0]
    flops = 2 * b * (
        w1.shape[0] * w1.shape[1]
        + w2.shape[0] * w2.shape[1]
        + w3.shape[0] * w3.shape[1]
        + w4p.shape[0] * w4p.shape[1]
    )
    bytes_accessed = 4 * (x.size + w1.size + w2.size + w3.size + w4p.size + vec.size + b * LANES)

    vmem_spec = pl.BlockSpec(memory_space=pltpu.MemorySpace.VMEM)

    y_pad = pl.pallas_call(
        simple_fnn_kernel,
        out_shape=jax.ShapeDtypeStruct((b, LANES), jnp.float32),
        # No grid: single invocation, whole arrays resident in VMEM (~40 KB total,
        # fits the scoped VMEM limit on all of v5e/v6e/v7x).
        in_specs=[vmem_spec] * 6,
        out_specs=vmem_spec,
        cost_estimate=pl.CostEstimate(
            flops=flops,
            transcendentals=w1.shape[1] + w2.shape[1] + w3.shape[1],
            bytes_accessed=bytes_accessed,
        ),
    )(x, w1, w2, w3, w4p, vec)
    return y_pad[:, :y_dim]


def init_params(key, x_dim, w1, w2, w3, y_dim):
    """Deterministic synthetic parameters (PyTorch-default-like uniform init).
    Linear biases b1..b3 are created (to mirror the module) but the kernel does
    not need them; the reference uses them to prove the cancellation is exact."""
    dims = [(x_dim, w1), (w1, w2), (w2, w3), (w3, y_dim)]
    params = {}
    keys = jax.random.split(key, 2 * len(dims))
    for i, (fan_in, fan_out) in enumerate(dims):
        bound = 1.0 / jnp.sqrt(jnp.float32(fan_in))
        params[f"w{i + 1}"] = jax.random.uniform(
            keys[2 * i], (fan_in, fan_out), jnp.float32, -bound, bound
        )
        params[f"b{i + 1}"] = jax.random.uniform(
            keys[2 * i + 1], (1, fan_out), jnp.float32, -bound, bound
        )
    for i, d in enumerate([w1, w2, w3], start=1):
        params[f"g{i}"] = jnp.ones((1, d), jnp.float32)
        params[f"be{i}"] = jnp.zeros((1, d), jnp.float32)
    return params


def reference_forward(x, params):
    """Plain-JAX reference mirroring PyTorch training-mode forward exactly
    (including the Linear biases and the two-pass variance)."""
    h = x
    for i in range(1, 4):
        h = h @ params[f"w{i}"] + params[f"b{i}"]
        mu = jnp.mean(h, axis=0, keepdims=True)
        var = jnp.mean((h - mu) ** 2, axis=0, keepdims=True)
        h = (h - mu) / jnp.sqrt(var + EPS)
        h = h * params[f"g{i}"] + params[f"be{i}"]
        h = jnp.maximum(h, 0.0)
    return h @ params["w4"] + params["b4"]


if __name__ == "__main__":
    # Small MNIST-like shapes: batch=8, x_dim=32, hidden=64/64/32, y_dim=16.
    B, X_DIM, W1, W2, W3, Y_DIM = 8, 32, 64, 64, 32, 16

    key = jax.random.PRNGKey(0)
    kx, kp = jax.random.split(key)
    x = jax.random.normal(kx, (B, X_DIM), jnp.float32)
    params = init_params(kp, X_DIM, W1, W2, W3, Y_DIM)

    w1, w2, w3, w4p, vec = pack_params(params)
    y = simple_fnn_forward(x, w1, w2, w3, w4p, vec, y_dim=Y_DIM)
    y = jax.block_until_ready(y)

    y_ref = reference_forward(x, params)
    assert y.shape == (B, Y_DIM)
    assert jnp.allclose(y, y_ref, atol=1e-4, rtol=1e-3), "mismatch vs reference"

    print("KERNEL_OK")
</pallas_src>

<mosaic_0001>
module attributes {stable_mosaic.version = 11 : i64} {
  func.func @simple_fnn_kernel(%arg0: memref<8x32xf32, #tpu.memory_space<vmem>>, %arg1: memref<32x64xf32, #tpu.memory_space<vmem>>, %arg2: memref<64x64xf32, #tpu.memory_space<vmem>>, %arg3: memref<64x32xf32, #tpu.memory_space<vmem>>, %arg4: memref<32x128xf32, #tpu.memory_space<vmem>>, %arg5: memref<8x128xf32, #tpu.memory_space<vmem>>, %arg6: memref<8x128xf32, #tpu.memory_space<vmem>>) attributes {dimension_semantics = [], scalar_prefetch = 0 : i64, scratch_operands = 0 : i64, tpu.core_type = #tpu.core_type<tc>} {
    %c0 = arith.constant 0 : index
    %c0_0 = arith.constant 0 : index
    %0 = vector.load %arg0[%c0, %c0_0] : memref<8x32xf32, #tpu.memory_space<vmem>>, vector<8x32xf32>
    %c0_1 = arith.constant 0 : index
    %c0_2 = arith.constant 0 : index
    %1 = vector.load %arg5[%c0_1, %c0_2] : memref<8x128xf32, #tpu.memory_space<vmem>>, vector<8x128xf32>
    %c0_3 = arith.constant 0 : index
    %c0_4 = arith.constant 0 : index
    %2 = vector.load %arg1[%c0_3, %c0_4] : memref<32x64xf32, #tpu.memory_space<vmem>>, vector<32x64xf32>
    %cst = arith.constant dense<0.000000e+00> : vector<8x64xf32>
    %3 = tpu.matmul %0, %2, %cst {dimension_numbers = #tpu.dot_dimension_numbers<[1], [0], [0], [1], [0, 0, 1, 1], [], []>} : vector<8x32xf32>, vector<32x64xf32>, vector<8x64xf32> -> vector<8x64xf32>
    %4 = vector.extract_strided_slice %1 {offsets = [0, 0], sizes = [1, 64], strides = [1, 1]} : vector<8x128xf32> to vector<1x64xf32>
    %5 = vector.extract_strided_slice %1 {offsets = [1, 0], sizes = [1, 64], strides = [1, 1]} : vector<8x128xf32> to vector<1x64xf32>
    %cst_5 = arith.constant dense<0.000000e+00> : vector<64xf32>
    %6 = vector.multi_reduction <add>, %3, %cst_5 [0] : vector<8x64xf32> to vector<64xf32>
    %7 = vector.shape_cast %6 : vector<64xf32> to vector<1x64xf32>
    %8 = arith.mulf %3, %3 : vector<8x64xf32>
    %cst_6 = arith.constant dense<0.000000e+00> : vector<64xf32>
    %9 = vector.multi_reduction <add>, %8, %cst_6 [0] : vector<8x64xf32> to vector<64xf32>
    %10 = vector.shape_cast %9 : vector<64xf32> to vector<1x64xf32>
    %cst_7 = arith.constant 1.250000e-01 : f32
    %11 = vector.broadcast %cst_7 : f32 to vector<1x64xf32>
    %12 = arith.mulf %7, %11 : vector<1x64xf32>
    %cst_8 = arith.constant 1.250000e-01 : f32
    %13 = vector.broadcast %cst_8 : f32 to vector<1x64xf32>
    %14 = arith.mulf %10, %13 : vector<1x64xf32>
    %15 = arith.mulf %12, %12 : vector<1x64xf32>
    %16 = arith.subf %14, %15 : vector<1x64xf32>
    %cst_9 = arith.constant 9.99999974E-6 : f32
    %17 = vector.broadcast %cst_9 : f32 to vector<1x64xf32>
    %18 = arith.addf %16, %17 : vector<1x64xf32>
    %19 = math.rsqrt %18 : vector<1x64xf32>
    %20 = arith.mulf %4, %19 : vector<1x64xf32>
    %21 = arith.mulf %12, %20 : vector<1x64xf32>
    %22 = arith.subf %5, %21 : vector<1x64xf32>
    %23 = vector.broadcast %20 : vector<1x64xf32> to vector<8x64xf32>
    %24 = arith.mulf %3, %23 : vector<8x64xf32>
    %25 = vector.broadcast %22 : vector<1x64xf32> to vector<8x64xf32>
    %26 = arith.addf %24, %25 : vector<8x64xf32>
    %cst_10 = arith.constant 0.000000e+00 : f32
    %27 = vector.broadcast %cst_10 : f32 to vector<8x64xf32>
    %28 = arith.maximumf %26, %27 : vector<8x64xf32>
    %c0_11 = arith.constant 0 : index
    %c0_12 = arith.constant 0 : index
    %29 = vector.load %arg2[%c0_11, %c0_12] : memref<64x64xf32, #tpu.memory_space<vmem>>, vector<64x64xf32>
    %cst_13 = arith.constant dense<0.000000e+00> : vector<8x64xf32>
    %30 = tpu.matmul %28, %29, %cst_13 {dimension_numbers = #tpu.dot_dimension_numbers<[1], [0], [0], [1], [0, 0, 1, 1], [], []>} : vector<8x64xf32>, vector<64x64xf32>, vector<8x64xf32> -> vector<8x64xf32>
    %31 = vector.extract_strided_slice %1 {offsets = [2, 0], sizes = [1, 64], strides = [1, 1]} : vector<8x128xf32> to vector<1x64xf32>
    %32 = vector.extract_strided_slice %1 {offsets = [3, 0], sizes = [1, 64], strides = [1, 1]} : vector<8x128xf32> to vector<1x64xf32>
    %cst_14 = arith.constant dense<0.000000e+00> : vector<64xf32>
    %33 = vector.multi_reduction <add>, %30, %cst_14 [0] : vector<8x64xf32> to vector<64xf32>
    %34 = vector.shape_cast %33 : vector<64xf32> to vector<1x64xf32>
    %35 = arith.mulf %30, %30 : vector<8x64xf32>
    %cst_15 = arith.constant dense<0.000000e+00> : vector<64xf32>
    %36 = vector.multi_reduction <add>, %35, %cst_15 [0] : vector<8x64xf32> to vector<64xf32>
    %37 = vector.shape_cast %36 : vector<64xf32> to vector<1x64xf32>
    %cst_16 = arith.constant 1.250000e-01 : f32
    %38 = vector.broadcast %cst_16 : f32 to vector<1x64xf32>
    %39 = arith.mulf %34, %38 : vector<1x64xf32>
    %cst_17 = arith.constant 1.250000e-01 : f32
    %40 = vector.broadcast %cst_17 : f32 to vector<1x64xf32>
    %41 = arith.mulf %37, %40 : vector<1x64xf32>
    %42 = arith.mulf %39, %39 : vector<1x64xf32>
    %43 = arith.subf %41, %42 : vector<1x64xf32>
    %cst_18 = arith.constant 9.99999974E-6 : f32
    %44 = vector.broadcast %cst_18 : f32 to vector<1x64xf32>
    %45 = arith.addf %43, %44 : vector<1x64xf32>
    %46 = math.rsqrt %45 : vector<1x64xf32>
    %47 = arith.mulf %31, %46 : vector<1x64xf32>
    %48 = arith.mulf %39, %47 : vector<1x64xf32>
    %49 = arith.subf %32, %48 : vector<1x64xf32>
    %50 = vector.broadcast %47 : vector<1x64xf32> to vector<8x64xf32>
    %51 = arith.mulf %30, %50 : vector<8x64xf32>
    %52 = vector.broadcast %49 : vector<1x64xf32> to vector<8x64xf32>
    %53 = arith.addf %51, %52 : vector<8x64xf32>
    %cst_19 = arith.constant 0.000000e+00 : f32
    %54 = vector.broadcast %cst_19 : f32 to vector<8x64xf32>
    %55 = arith.maximumf %53, %54 : vector<8x64xf32>
    %c0_20 = arith.constant 0 : index
    %c0_21 = arith.constant 0 : index
    %56 = vector.load %arg3[%c0_20, %c0_21] : memref<64x32xf32, #tpu.memory_space<vmem>>, vector<64x32xf32>
    %cst_22 = arith.constant dense<0.000000e+00> : vector<8x32xf32>
    %57 = tpu.matmul %55, %56, %cst_22 {dimension_numbers = #tpu.dot_dimension_numbers<[1], [0], [0], [1], [0, 0, 1, 1], [], []>} : vector<8x64xf32>, vector<64x32xf32>, vector<8x32xf32> -> vector<8x32xf32>
    %58 = vector.extract_strided_slice %1 {offsets = [4, 0], sizes = [1, 32], strides = [1, 1]} : vector<8x128xf32> to vector<1x32xf32>
    %59 = vector.extract_strided_slice %1 {offsets = [5, 0], sizes = [1, 32], strides = [1, 1]} : vector<8x128xf32> to vector<1x32xf32>
    %cst_23 = arith.constant dense<0.000000e+00> : vector<32xf32>
    %60 = vector.multi_reduction <add>, %57, %cst_23 [0] : vector<8x32xf32> to vector<32xf32>
    %61 = vector.shape_cast %60 : vector<32xf32> to vector<1x32xf32>
    %62 = arith.mulf %57, %57 : vector<8x32xf32>
    %cst_24 = arith.constant dense<0.000000e+00> : vector<32xf32>
    %63 = vector.multi_reduction <add>, %62, %cst_24 [0] : vector<8x32xf32> to vector<32xf32>
    %64 = vector.shape_cast %63 : vector<32xf32> to vector<1x32xf32>
    %cst_25 = arith.constant 1.250000e-01 : f32
    %65 = vector.broadcast %cst_25 : f32 to vector<1x32xf32>
    %66 = arith.mulf %61, %65 : vector<1x32xf32>
    %cst_26 = arith.constant 1.250000e-01 : f32
    %67 = vector.broadcast %cst_26 : f32 to vector<1x32xf32>
    %68 = arith.mulf %64, %67 : vector<1x32xf32>
    %69 = arith.mulf %66, %66 : vector<1x32xf32>
    %70 = arith.subf %68, %69 : vector<1x32xf32>
    %cst_27 = arith.constant 9.99999974E-6 : f32
    %71 = vector.broadcast %cst_27 : f32 to vector<1x32xf32>
    %72 = arith.addf %70, %71 : vector<1x32xf32>
    %73 = math.rsqrt %72 : vector<1x32xf32>
    %74 = arith.mulf %58, %73 : vector<1x32xf32>
    %75 = arith.mulf %66, %74 : vector<1x32xf32>
    %76 = arith.subf %59, %75 : vector<1x32xf32>
    %77 = vector.broadcast %74 : vector<1x32xf32> to vector<8x32xf32>
    %78 = arith.mulf %57, %77 : vector<8x32xf32>
    %79 = vector.broadcast %76 : vector<1x32xf32> to vector<8x32xf32>
    %80 = arith.addf %78, %79 : vector<8x32xf32>
    %cst_28 = arith.constant 0.000000e+00 : f32
    %81 = vector.broadcast %cst_28 : f32 to vector<8x32xf32>
    %82 = arith.maximumf %80, %81 : vector<8x32xf32>
    %c0_29 = arith.constant 0 : index
    %c0_30 = arith.constant 0 : index
    %83 = vector.load %arg4[%c0_29, %c0_30] : memref<32x128xf32, #tpu.memory_space<vmem>>, vector<32x128xf32>
    %cst_31 = arith.constant dense<0.000000e+00> : vector<8x128xf32>
    %84 = tpu.matmul %82, %83, %cst_31 {dimension_numbers = #tpu.dot_dimension_numbers<[1], [0], [0], [1], [0, 0, 1, 1], [], []>} : vector<8x32xf32>, vector<32x128xf32>, vector<8x128xf32> -> vector<8x128xf32>
    %85 = vector.extract_strided_slice %1 {offsets = [6, 0], sizes = [1, 128], strides = [1, 1]} : vector<8x128xf32> to vector<1x128xf32>
    %86 = vector.broadcast %85 : vector<1x128xf32> to vector<8x128xf32>
    %87 = arith.addf %84, %86 : vector<8x128xf32>
    %c0_32 = arith.constant 0 : index
    %c0_33 = arith.constant 0 : index
    %88 = vector.load %arg6[%c0_32, %c0_33] : memref<8x128xf32, #tpu.memory_space<vmem>>, vector<8x128xf32>
    tpu.vector_store %arg6[%c0_32, %c0_33], %87 {strides = array<i32>} : memref<8x128xf32, #tpu.memory_space<vmem>>, vector<8x128xf32>,
    return
  }
}

</mosaic_0001>

<bundles_post_ra>
// kernel: simple_fnn_forward.1
= control target key start
LH: loop header
LB: loop body
LE: loop exit
PB: predicated region body
PF: predicated region fallthrough
CT: control target
= control target key end

     0   :  { %11 = vsyncpa [#allocation3], 0  ;;  %s580_s0 = inlined_call_operand.hbm [shape: f32[8,32], index: 0, kind: input, shape index: {}]   ;;  %s581_s1 = inlined_call_operand.vmem [shape: f32[32,64], index: 1, kind: input, shape index: {}]   ;;  %s582_s2 = inlined_call_operand.vmem [shape: f32[64,64], index: 2, kind: input, shape index: {}]   ;;  %s583_s3 = inlined_call_operand.vmem [shape: f32[64,32], index: 3, kind: input, shape index: {}]   ;;  %s584_s4 = inlined_call_operand.hbm [shape: f32[32,128], index: 4, kind: input, shape index: {}]   ;;  %s585_s5 = inlined_call_operand.hbm [shape: f32[8,128], index: 5, kind: input, shape index: {}]   ;;  %s586_s6 = inlined_call_operand.hbm [shape: f32[8,128], index: 6, kind: output, shape index: {}]  }
   0x1   :  { %12 = vsyncpa [#allocation6], 0  ;;  %s35_s23 = sshll.u32 %s584_s4, 4  ;;  %s36_s23 = int_to_ptr.hbm [resolvable:$true] %s35_s23 }
   0x2   :  { %13 = vsyncpa [#allocation4], 0  ;;  %s448_s24 = smov [#allocation5]   ;;  %s19_s28 = sshll.u32 %s580_s0, 4  ;;  %s20_s28 = int_to_ptr.hbm [resolvable:$true] %s19_s28 }
   0x3   :  { %s37_s25 = sshll.u32 %s448_s24, 4  ;;  %s449_s29 = smov 128   ;;  %s38_s25 = int_to_ptr.vmem [resolvable:$true] %s37_s25 }
   0x4   :  { %s450_s30 = smov 8   ;;  %s451_s7 = smov [#allocation2]  }
   0x5   :  { %43 = dma.hbm_to_vmem [thread:$0]  %s36_s23, 512, %s38_s25, [#allocation6], %s449_s29, %s449_s29, %s450_s30  }
   0x6   :  { %s21_s8 = sshll.u32 %s451_s7, 4  ;;  %s49_s11 = sshll.u32 %s585_s5, 4  ;;  %s22_s8 = int_to_ptr.vmem [resolvable:$true] %s21_s8  ;;  %s50_s11 = int_to_ptr.hbm [resolvable:$true] %s49_s11 }
   0x7   :  { %24 = dma.hbm_to_vmem [thread:$0]  %s20_s28, 128, %s22_s8, [#allocation3]  }
   0x8   :  { %s452_s4 = smov [#allocation7]  }
   0x9   :  { %s51_s12 = sshll.u32 %s452_s4, 4  ;;  %s52_s12 = int_to_ptr.vmem [resolvable:$true] %s51_s12 }
   0xa   :  { %54 = dma.hbm_to_vmem [thread:$0]  %s50_s11, 128, %s52_s12, [#allocation6]  }
   0xb   :  { %442 = dma.done.wait [#allocation3], 128  }
   0xc   :  { %443 = vsyncadd [#allocation3], 4294967168 }
   0xd   :  { %444 = dma.done.wait [#allocation6], 640  }
   0xe   :  { %445 = vsyncadd [#allocation6], 4294966656  ;;  %v72_v0 = vld [vmem:[%s581_s1 + $0x18] sm:$0xff]  ;;  %v71_v1 = vld [vmem:[%s581_s1 + $0x10] sm:$0xff]  ;;  %vm73_vm0 = vcmask 261120   ;;  %vm97_vm1 = vcmask 523264  }
   0xf   :  { %89 = vmatpush.msra.mxu0 %v72_v0  ;;  %v70_v2 = vld [vmem:[%s581_s1 + $0x8] sm:$0xff]  ;;  %v69_v3 = vld [vmem:[%s581_s1] sm:$0xff]  ;;  %v146_v14 = vld [vmem:[%s582_s2 + $0x38] sm:$0xff]  ;;  %s319_s24 = sshll.u32 %s586_s6, 4  ;;  %s320_s24 = int_to_ptr.hbm [resolvable:$true] %s319_s24 }
  0x10   :  { %v67_v4 = vld [vmem:[#allocation2] sm:$0xff]  ;;  %158 = vmatpush.msra.mxu1 %v146_v14  ;;  %v145_v17 = vld [vmem:[%s582_s2 + $0x30] sm:$0xff]  ;;  %v144_v20 = vld [vmem:[%s582_s2 + $0x28] sm:$0xff] }
  0x11   :  { %90 = vmatpush.msra.mxu0 %v71_v1  ;;  %v143_v23 = vld [vmem:[%s582_s2 + $0x20] sm:$0xff]  ;;  %v142_v26 = vld [vmem:[%s582_s2 + $0x18] sm:$0xff]  ;;  %v141_v29 = vld [vmem:[%s582_s2 + $0x10] sm:$0xff] }
  0x12   :  { %159 = vmatpush.msra.mxu1 %v145_v17  ;;  %v140_v31 = vld [vmem:[%s582_s2 + $0x8] sm:$0xff]  ;;  %v139_v32 = vld [vmem:[%s582_s2] sm:$0xff]  ;;  %v218_v60 = vld [vmem:[%s583_s3 + $0x38] sm:$0xff] }
  0x13   :  { %91 = vmatpush.msra.mxu0 %v70_v2  ;;  %v537_v39 = vld [vmem:[#allocation7] sm:$0xff]  ;;  %230 = vmatpush.msra.mxu2 %v218_v60  ;;  %v217_v63 = vld [vmem:[%s583_s3 + $0x30] sm:$0xff]  ;;  %v211_v14 = vld [vmem:[%s583_s3] sm:$0xff] }
  0x14   :  { %160 = vmatpush.msra.mxu1 %v144_v20  ;;  %v216_v2 = vld [vmem:[%s583_s3 + $0x28] sm:$0xff] }
  0x15   :  { %92 = vmatpush.msra.mxu0 %v69_v3  ;;  %231 = vmatpush.msra.mxu2 %v217_v63 }
  0x16   :  { %330 = vmatmul.msk.f32.vlgmr.msra.gmra.mxu0 %vm73_vm0, %v67_v4  ;;  %161 = vmatpush.msra.mxu1 %v143_v23 }
  0x17   :  { %232 = vmatpush.msra.mxu2 %v216_v2 }
  0x18   :  { %162 = vmatpush.msra.mxu1 %v142_v26 }
  0x1a   :  { %163 = vmatpush.msra.mxu1 %v141_v29 }
  0x1c   :  { %164 = vmatpush.msra.mxu1 %v140_v31 }
  0x1e   :  { %165 = vmatpush.msra.mxu1 %v139_v32 }
  0x93   :  { %v94_v5 = vpop.f32.mrf.mxu0 }
  0x94   :  { %v98_v6 = vsel %vm97_vm1, %v94_v5, 0.0  ;;  %v105_v7 = vmul.f32 %v94_v5, %v94_v5 }
  0x95   :  { %v99_v8 = vrot.slane %v98_v6, 4 }
  0x96   :  { %v106_v9 = vsel %vm97_vm1, %v105_v7, 0.0 }
  0x97   :  { %v100_v10 = vadd.f32 %v99_v8, %v98_v6  ;;  %v107_v11 = vrot.slane %v106_v9, 4  ;;  %v214_v8 = vld [vmem:[%s583_s3 + $0x18] sm:$0xff] }
  0x99   :  { %v101_v12 = vrot.slane %v100_v10, 2  ;;  %v108_v13 = vadd.f32 %v107_v11, %v106_v9  ;;  %v213_v11 = vld [vmem:[%s583_s3 + $0x10] sm:$0xff] }
  0x9b   :  { %v102_v15 = vadd.f32 %v101_v12, %v100_v10  ;;  %v109_v16 = vrot.slane %v108_v13, 2 }
  0x9d   :  { %v103_v18 = vrot.slane %v102_v15, 1  ;;  %v110_v19 = vadd.f32 %v109_v16, %v108_v13  ;;  %v212_v13 = vld [vmem:[%s583_s3 + $0x8] sm:$0xff] }
  0x9f   :  { %v104_v21 = vadd.f32 %v103_v18, %v102_v15  ;;  %v111_v22 = vrot.slane %v110_v19, 1 }
  0xa1   :  { %v112_v24 = vadd.f32 %v111_v22, %v110_v19  ;;  %v113_v25 = vmul.f32 0.125, %v104_v21 }
  0xa3   :  { %v114_v27 = vmul.f32 0.125, %v112_v24  ;;  %v115_v28 = vmul.f32 %v113_v25, %v113_v25 }
  0xa5   :  { %v116_v30 = vsub.f32 %v114_v27, %v115_v28 }
  0xa7   :  { %v117_v33 = vadd.f32 1e-05, %v116_v30 }
  0xa9   :  { %340 = vrsqrt.f32 %v117_v33  ;;  %vm124_vm3 = vweird.f32 %v117_v33 }
  0xaf   :  { %v341_v34 = vpop.eup %340 }
  0xb0   :  { %v119_v35 = vmul.f32 %v341_v34, %v117_v33  ;;  %vm125_vm2 = vweird.f32 %v341_v34 }
  0xb1   :  { %vm126_vm4 = vmor %vm124_vm3, %vm125_vm2 }
  0xb2   :  { %v120_v36 = vmul.f32 %v341_v34, %v119_v35 }
  0xb4   :  { %v121_v37 = vmul.f32 0.5, %v120_v36 }
  0xb6   :  { %v122_v38 = vsub.f32 1.5, %v121_v37 }
  0xb8   :  { %v123_v40 = vmul.f32 %v341_v34, %v122_v38 }
  0xba   :  { %v127_v41 = vsel %vm126_vm4, %v341_v34, %v123_v40 }
  0xbb   :  { %v128_v42 = vmul.f32 %v127_v41, %v537_v39 }
  0xbd   :  { %v129_v43 = vmul.f32 %v128_v42, %v113_v25  ;;  %v134_v45 = vperm.slane %v128_v42, 0 }
  0xbf   :  { %v131_v44 = vrot.slane %v129_v43, 7  ;;  %v135_v47 = vmul.f32 %v134_v45, %v94_v5  ;;  %v215_v5 = vld [vmem:[%s583_s3 + $0x20] sm:$0xff]  ;;  %s453_s3 = smov [#allocation8]  }
  0xc0   :  { %233 = vmatpush.msra.mxu2 %v215_v5  ;;  %s317_s21 = sshll.u32 %s453_s3, 4  ;;  %s318_s21 = int_to_ptr.vmem [resolvable:$true] %s317_s21 }
  0xc1   :  { %v133_v46 = vsub.f32 %v537_v39, %v131_v44 }
  0xc2   :  { %234 = vmatpush.msra.mxu2 %v214_v8 }
  0xc3   :  { %v136_v48 = vperm.slane %v133_v46, 1 }
  0xc4   :  { %235 = vmatpush.msra.mxu2 %v213_v11 }
  0xc5   :  { %v137_v49 = vadd.f32 %v136_v48, %v135_v47 }
  0xc6   :  { %236 = vmatpush.msra.mxu2 %v212_v13 }
  0xc7   :  { %v138_v50 = vmax.f32 %v137_v49, 0.0 }
  0xc8   :  { %237 = vmatpush.msra.mxu2 %v211_v14 }
  0xc9   :  { %331 = vmatmul.msk.f32.vlgmr.msra.gmra.mxu1 %vm97_vm1, %v138_v50  ;;  %v286_v50 = vld [vmem:[#allocation5 + $0x18] sm:$0xff] }
  0xca   :  { %303 = vmatpush.msra.mxu3 %v286_v50 }
 0x146   :  { %v167_v51 = vpop.f32.mrf.mxu1 }
 0x147   :  { %v170_v52 = vsel %vm97_vm1, %v167_v51, 0.0  ;;  %v177_v53 = vmul.f32 %v167_v51, %v167_v51 }
 0x148   :  { %v171_v54 = vrot.slane %v170_v52, 4 }
 0x149   :  { %v178_v55 = vsel %vm97_vm1, %v177_v53, 0.0  ;;  %v285_v53 = vld [vmem:[#allocation5 + $0x10] sm:$0xff] }
 0x14a   :  { %v172_v56 = vadd.f32 %v171_v54, %v170_v52  ;;  %v179_v57 = vrot.slane %v178_v55, 4  ;;  %304 = vmatpush.msra.mxu3 %v285_v53 }
 0x14c   :  { %v173_v58 = vrot.slane %v172_v56, 2  ;;  %v180_v59 = vadd.f32 %v179_v57, %v178_v55  ;;  %v284_v55 = vld [vmem:[#allocation5 + $0x8] sm:$0xff] }
 0x14d   :  { %305 = vmatpush.msra.mxu3 %v284_v55 }
 0x14e   :  { %v174_v61 = vadd.f32 %v173_v58, %v172_v56  ;;  %v181_v62 = vrot.slane %v180_v59, 2  ;;  %v283_v56 = vld [vmem:[#allocation5] sm:$0xff] }
 0x14f   :  { %306 = vmatpush.msra.mxu3 %v283_v56 }
 0x150   :  { %v175_v0 = vrot.slane %v174_v61, 1  ;;  %v182_v1 = vadd.f32 %v181_v62, %v180_v59 }
 0x152   :  { %v176_v3 = vadd.f32 %v175_v0, %v174_v61  ;;  %v183_v4 = vrot.slane %v182_v1, 1 }
 0x154   :  { %v184_v6 = vadd.f32 %v183_v4, %v182_v1  ;;  %v185_v7 = vmul.f32 0.125, %v176_v3 }
 0x156   :  { %v186_v9 = vmul.f32 0.125, %v184_v6  ;;  %v187_v10 = vmul.f32 %v185_v7, %v185_v7 }
 0x158   :  { %v188_v12 = vsub.f32 %v186_v9, %v187_v10  ;;  %v287_v10 = vperm.slane %v537_v39, 6 }
 0x15a   :  { %v189_v15 = vadd.f32 1e-05, %v188_v12 }
 0x15c   :  { %342 = vrsqrt.f32 %v189_v15  ;;  %vm196_vm6 = vweird.f32 %v189_v15 }
 0x162   :  { %v343_v16 = vpop.eup %342 }
 0x163   :  { %v191_v17 = vmul.f32 %v343_v16, %v189_v15  ;;  %vm197_vm5 = vweird.f32 %v343_v16 }
 0x164   :  { %vm198_vm7 = vmor %vm196_vm6, %vm197_vm5 }
 0x165   :  { %v192_v18 = vmul.f32 %v343_v16, %v191_v17 }
 0x167   :  { %v193_v19 = vmul.f32 0.5, %v192_v18 }
 0x169   :  { %v194_v20 = vsub.f32 1.5, %v193_v19 }
 0x16b   :  { %v195_v21 = vmul.f32 %v343_v16, %v194_v20 }
 0x16d   :  { %v199_v22 = vsel %vm198_vm7, %v343_v16, %v195_v21 }
 0x16e   :  { %v200_v23 = vmul.f32 %v199_v22, %v537_v39 }
 0x170   :  { %v201_v24 = vmul.f32 %v200_v23, %v185_v7  ;;  %v206_v26 = vperm.slane %v200_v23, 2 }
 0x172   :  { %v203_v25 = vrot.slane %v201_v24, 7  ;;  %v207_v28 = vmul.f32 %v206_v26, %v167_v51 }
 0x174   :  { %v205_v27 = vsub.f32 %v537_v39, %v203_v25 }
 0x176   :  { %v208_v29 = vperm.slane %v205_v27, 3 }
 0x178   :  { %v209_v30 = vadd.f32 %v208_v29, %v207_v28 }
 0x17a   :  { %v210_v31 = vmax.f32 %v209_v30, 0.0 }
 0x17c   :  { %332 = vmatmul.msk.f32.vlgmr.msra.gmra.mxu2 %vm97_vm1, %v210_v31 }
 0x1ff   :  { %v239_v32 = vpop.f32.mrf.mxu2 }
 0x200   :  { %v242_v33 = vsel %vm73_vm0, %v239_v32, 0.0  ;;  %v249_v34 = vmul.f32 %v239_v32, %v239_v32 }
 0x201   :  { %v243_v35 = vrot.slane %v242_v33, 4 }
 0x202   :  { %v250_v36 = vsel %vm73_vm0, %v249_v34, 0.0 }
 0x203   :  { %v244_v37 = vadd.f32 %v243_v35, %v242_v33  ;;  %v251_v38 = vrot.slane %v250_v36, 4 }
 0x205   :  { %v245_v40 = vrot.slane %v244_v37, 2  ;;  %v252_v41 = vadd.f32 %v251_v38, %v250_v36 }
 0x207   :  { %v246_v42 = vadd.f32 %v245_v40, %v244_v37  ;;  %v253_v43 = vrot.slane %v252_v41, 2 }
 0x209   :  { %v247_v44 = vrot.slane %v246_v42, 1  ;;  %v254_v45 = vadd.f32 %v253_v43, %v252_v41 }
 0x20b   :  { %v248_v46 = vadd.f32 %v247_v44, %v246_v42  ;;  %v255_v47 = vrot.slane %v254_v45, 1 }
 0x20d   :  { %v256_v48 = vadd.f32 %v255_v47, %v254_v45  ;;  %v257_v49 = vmul.f32 0.125, %v248_v46 }
 0x20f   :  { %v258_v51 = vmul.f32 0.125, %v256_v48  ;;  %v259_v52 = vmul.f32 %v257_v49, %v257_v49 }
 0x211   :  { %v260_v54 = vsub.f32 %v258_v51, %v259_v52 }
 0x213   :  { %v261_v57 = vadd.f32 1e-05, %v260_v54 }
 0x215   :  { %344 = vrsqrt.f32 %v261_v57  ;;  %vm268_vm9 = vweird.f32 %v261_v57 }
 0x21b   :  { %v345_v58 = vpop.eup %344 }
 0x21c   :  { %v263_v59 = vmul.f32 %v345_v58, %v261_v57  ;;  %vm269_vm8 = vweird.f32 %v345_v58 }
 0x21d   :  { %vm270_vm10 = vmor %vm268_vm9, %vm269_vm8 }
 0x21e   :  { %v264_v60 = vmul.f32 %v345_v58, %v263_v59 }
 0x220   :  { %v265_v61 = vmul.f32 0.5, %v264_v60 }
 0x222   :  { %v266_v62 = vsub.f32 1.5, %v265_v61 }
 0x224   :  { %v267_v63 = vmul.f32 %v345_v58, %v266_v62 }
 0x226   :  { %v271_v0 = vsel %vm270_vm10, %v345_v58, %v267_v63 }
 0x227   :  { %v272_v1 = vmul.f32 %v271_v0, %v537_v39 }
 0x229   :  { %v273_v2 = vmul.f32 %v272_v1, %v257_v49  ;;  %v278_v4 = vperm.slane %v272_v1, 4 }
 0x22b   :  { %v275_v3 = vrot.slane %v273_v2, 7  ;;  %v279_v6 = vmul.f32 %v278_v4, %v239_v32 }
 0x22d   :  { %v277_v5 = vsub.f32 %v537_v39, %v275_v3 }
 0x22f   :  { %v280_v7 = vperm.slane %v277_v5, 5 }
 0x231   :  { %v281_v8 = vadd.f32 %v280_v7, %v279_v6 }
 0x233   :  { %v282_v9 = vmax.f32 %v281_v8, 0.0 }
 0x235   :  { %333 = vmatmul.msk.f32.vlgmr.msra.gmra.mxu3 %vm73_vm0, %v282_v9 }
 0x2b8   :  { %v308_v11 = vpop.f32.mrf.mxu3 }
 0x2b9   :  { %v309_v12 = vadd.f32 %v308_v11, %v287_v10 }
 0x2bb   :  { %311 = vst [vmem:[#allocation8] sm:$0xff] %v309_v12 }
 0x2bc   :  { %322 = dma.vmem_to_hbm [thread:$0]  %s318_s21, 128, %s320_s24, [#allocation4]  }
 0x2bd   :  { %446 = dma.done.wait [#allocation4], 128  }
 0x2be   :  { %447 = vsyncadd [#allocation4], 4294967168 }
 0x2bf   :  { %327 = vsyncpa [#allocation3], 1 }
 0x2c0   :  { %328 = vsyncpa [#allocation6], 1 }
 0x2c1   :  { %329 = vsyncpa [#allocation4], 1 }

</bundles_post_ra>
